<compile_context>
chip_gen: v6e
topology: v6e:2x2x1
jax: 0.10.0
libtpu: 0.0.40
codegen_flags: <defaults>
</compile_context>

<pallas_src>
import functools

import jax
import jax.numpy as jnp
from jax import lax
from jax.experimental import pallas as pl
from jax.experimental.pallas import tpu as pltpu

_LANES = 128
_SUBLANES = 8
_MAX_TILE_ROWS = 1024  # 1024 x 128 x 4B = 512 KiB per f32 input block


def _multilabel_partial_sums_kernel(x_ref, y_ref, o_ref, *, total_elems,
                                    tile_rows, needs_mask):
    # Load in native dtype, cast to f32 on the vreg (free VPU work).
    x = x_ref[...].astype(jnp.float32)                       # (tile_rows, 128)
    # Emulate `targets.long()` (truncate toward zero), then back to f32.
    y = y_ref[...].astype(jnp.int32).astype(jnp.float32)

    # Numerically stable softplus(x) = max(x, 0) + log1p(exp(-|x|)).
    sp = jnp.maximum(x, 0.0) + jnp.log1p(jnp.exp(-jnp.abs(x)))
    # y*logsigmoid(x) + (1-y)*logsigmoid(-x) == y*x - softplus(x)
    term = y * x - sp

    if needs_mask:
        # Mask padded / out-of-bounds elements (partial last block or lane pad).
        i = pl.program_id(0)
        row = lax.broadcasted_iota(jnp.int32, term.shape, 0)
        lane = lax.broadcasted_iota(jnp.int32, term.shape, 1)
        gidx = (i * tile_rows + row) * _LANES + lane
        term = jnp.where(gidx < total_elems, term, 0.0)

    # Reduce sublane-groups -> lane-dense (8, 128) block of partial sums.
    o_ref[...] = term.reshape(tile_rows // _SUBLANES, _SUBLANES, _LANES).sum(axis=0)


def multilabel_soft_margin_loss(outputs, targets):
    """JAX wrapper emulating Multilabel.forward(outputs, targets)."""
    n, c = outputs.shape
    total = n * c

    # Lane-dense layout: flatten (N, C) -> (rows, 128). Row-major flatten is a
    # free reshape; pad (zeros, masked in-kernel) only if needed to keep rows a
    # multiple of 8.
    x_flat = outputs.reshape(-1)
    y_flat = targets.reshape(-1)

    quantum = _SUBLANES * _LANES  # 1024 elements = 8 full rows
    padded = pl.cdiv(total, quantum) * quantum
    if padded != total:
        pad = padded - total
        x_flat = jnp.pad(x_flat, (0, pad))
        y_flat = jnp.pad(y_flat, (0, pad))

    rows = padded // _LANES
    tile_rows = rows if rows <= _MAX_TILE_ROWS else _MAX_TILE_ROWS
    num_blocks = pl.cdiv(rows, tile_rows)
    needs_mask = (padded != total) or (rows % tile_rows != 0)

    x2 = x_flat.reshape(rows, _LANES)
    y2 = y_flat.reshape(rows, _LANES)

    kernel = functools.partial(
        _multilabel_partial_sums_kernel,
        total_elems=total, tile_rows=tile_rows, needs_mask=needs_mask)

    cost = pl.CostEstimate(
        flops=6 * total,
        transcendentals=2 * total,  # one exp + one log1p per element
        bytes_accessed=int(x2.size * x2.dtype.itemsize
                           + y2.size * y2.dtype.itemsize
                           + num_blocks * _SUBLANES * _LANES * 4))

    partials = pl.pallas_call(
        kernel,
        out_shape=jax.ShapeDtypeStruct((num_blocks * _SUBLANES, _LANES),
                                       jnp.float32),
        grid=(num_blocks,),
        in_specs=[
            pl.BlockSpec((tile_rows, _LANES), lambda i: (i, 0)),
            pl.BlockSpec((tile_rows, _LANES), lambda i: (i, 0)),
        ],
        out_specs=pl.BlockSpec((_SUBLANES, _LANES), lambda i: (i, 0)),
        compiler_params=pltpu.CompilerParams(
            dimension_semantics=("parallel",)),
        cost_estimate=cost,
    )(x2, y2)

    # loss = mean_n[-(1/C) * sum_c term] = -(1/(N*C)) * sum(term)
    return -jnp.sum(partials) / total


if __name__ == "__main__":
    key = jax.random.PRNGKey(0)
    k_out, k_tgt = jax.random.split(key)

    N, C = 8, 32  # small (batch, num_classes)
    outputs = jax.random.normal(k_out, (N, C), dtype=jnp.float32)
    # Multi-hot targets in {0, 1} (stored as float; module casts via .long()).
    targets = jax.random.bernoulli(k_tgt, p=0.3, shape=(N, C)).astype(jnp.float32)

    loss = multilabel_soft_margin_loss(outputs, targets)
    jax.block_until_ready(loss)

    # Pure-JAX reference (PyTorch MultiLabelSoftMarginLoss formula).
    def _ref(x, y):
        y = y.astype(jnp.int32).astype(jnp.float32)
        ls = lambda z: -(jnp.maximum(-z, 0.0) + jnp.log1p(jnp.exp(-jnp.abs(z))))
        term = y * ls(x) + (1.0 - y) * ls(-x)
        return jnp.mean(-jnp.mean(term, axis=-1))

    ref = _ref(outputs, targets)
    assert jnp.allclose(loss, ref, atol=1e-5, rtol=1e-5), (loss, ref)

    print("KERNEL_OK")
</pallas_src>

<mosaic_0001>
module attributes {stable_mosaic.version = 11 : i64} {
  func.func @_multilabel_partial_sums_kernel(%arg0: i32, %arg1: memref<8x128xf32, #tpu.memory_space<vmem>>, %arg2: memref<8x128xf32, #tpu.memory_space<vmem>>, %arg3: memref<8x128xf32, #tpu.memory_space<vmem>>) attributes {dimension_semantics = [#tpu.dimension_semantics<parallel>], iteration_bounds = array<i64: 1>, scalar_prefetch = 0 : i64, scratch_operands = 0 : i64, tpu.core_type = #tpu.core_type<tc>, window_params = [{transform_indices = @transform_0, window_bounds = array<i64: 8, 128>}, {transform_indices = @transform_1, window_bounds = array<i64: 8, 128>}, {transform_indices = @transform_2, window_bounds = array<i64: 8, 128>}]} {
    %c0 = arith.constant 0 : index
    %c0_0 = arith.constant 0 : index
    %0 = vector.load %arg1[%c0, %c0_0] : memref<8x128xf32, #tpu.memory_space<vmem>>, vector<8x128xf32>
    %c0_1 = arith.constant 0 : index
    %c0_2 = arith.constant 0 : index
    %1 = vector.load %arg2[%c0_1, %c0_2] : memref<8x128xf32, #tpu.memory_space<vmem>>, vector<8x128xf32>
    %2 = arith.fptosi %1 : vector<8x128xf32> to vector<8x128xi32>
    %3 = arith.sitofp %2 : vector<8x128xi32> to vector<8x128xf32>
    %cst = arith.constant 0.000000e+00 : f32
    %4 = vector.broadcast %cst : f32 to vector<8x128xf32>
    %5 = arith.maximumf %0, %4 : vector<8x128xf32>
    %6 = math.absf %0 : vector<8x128xf32>
    %cst_3 = arith.constant 0.000000e+00 : f32
    %7 = vector.broadcast %cst_3 : f32 to vector<8x128xf32>
    %8 = arith.subf %7, %6 : vector<8x128xf32>
    %9 = math.exp %8 : vector<8x128xf32>
    %10 = math.log1p %9 : vector<8x128xf32>
    %11 = arith.addf %5, %10 : vector<8x128xf32>
    %12 = arith.mulf %3, %0 : vector<8x128xf32>
    %13 = arith.subf %12, %11 : vector<8x128xf32>
    %14 = tpu.iota {dimensions = array<i32: 0>} : vector<8x128xi32>
    %15 = tpu.iota {dimensions = array<i32: 1>} : vector<8x128xi32>
    %c8_i32 = arith.constant 8 : i32
    %16 = arith.muli %arg0, %c8_i32 : i32
    %17 = vector.broadcast %16 : i32 to vector<8x128xi32>
    %18 = arith.addi %17, %14 : vector<8x128xi32>
    %c128_i32 = arith.constant 128 : i32
    %19 = vector.broadcast %c128_i32 : i32 to vector<8x128xi32>
    %20 = arith.muli %18, %19 : vector<8x128xi32>
    %21 = arith.addi %20, %15 : vector<8x128xi32>
    %c256_i32 = arith.constant 256 : i32
    %22 = vector.broadcast %c256_i32 : i32 to vector<8x128xi32>
    %23 = arith.cmpi slt, %21, %22 : vector<8x128xi32>
    %cst_4 = arith.constant 0.000000e+00 : f32
    %24 = vector.broadcast %cst_4 : f32 to vector<8x128xf32>
    %25 = arith.select %23, %13, %24 : vector<8x128xi1>, vector<8x128xf32>
    %26 = vector.shape_cast %25 : vector<8x128xf32> to vector<1x8x128xf32>
    %cst_5 = arith.constant dense<0.000000e+00> : vector<8x128xf32>
    %27 = vector.multi_reduction <add>, %26, %cst_5 [0] : vector<1x8x128xf32> to vector<8x128xf32>
    %c0_6 = arith.constant 0 : index
    %c0_7 = arith.constant 0 : index
    %28 = vector.load %arg3[%c0_6, %c0_7] : memref<8x128xf32, #tpu.memory_space<vmem>>, vector<8x128xf32>
    tpu.vector_store %arg3[%c0_6, %c0_7], %27 {strides = array<i32>} : memref<8x128xf32, #tpu.memory_space<vmem>>, vector<8x128xf32>,
    return
  }
  func.func @transform_0(%arg0: i32) -> (i32, i32) {
    %c0_i32 = arith.constant 0 : i32
    %c0_i32_0 = arith.constant 0 : i32
    return %arg0, %c0_i32 : i32, i32
  }
  func.func @transform_1(%arg0: i32) -> (i32, i32) {
    %c0_i32 = arith.constant 0 : i32
    %c0_i32_0 = arith.constant 0 : i32
    return %arg0, %c0_i32 : i32, i32
  }
  func.func @transform_2(%arg0: i32) -> (i32, i32) {
    %c0_i32 = arith.constant 0 : i32
    %c0_i32_0 = arith.constant 0 : i32
    return %arg0, %c0_i32 : i32, i32
  }
}

</mosaic_0001>

<bundles_post_ra>
// kernel: tpu_custom_call.1
= control target key start
LH: loop header
LB: loop body
LE: loop exit
PB: predicated region body
PF: predicated region fallthrough
CT: control target
= control target key end

     0   :  { %7 = vsyncpa [#allocation3], 0  ;;  %s188_s0 = inlined_call_operand.hbm [shape: f32[8,128], index: 0, kind: input, shape index: {}]   ;;  %s189_s1 = inlined_call_operand.hbm [shape: f32[8,128], index: 1, kind: input, shape index: {}]   ;;  %s190_s2 = inlined_call_operand.hbm [shape: f32[8,128], index: 2, kind: output, shape index: {}]  }
   0x1   :  { %8 = vsyncpa [#allocation6], 0 }
   0x2   :  { %9 = vsyncpa [#allocation4], 0  ;;  %s161_s9 = smov [#allocation2]   ;;  %s162_s11 = smov [#allocation5]  }
   0x3   :  { %s16_s10 = sshll.u32 %s161_s9, 4  ;;  %s26_s12 = sshll.u32 %s162_s11, 4  ;;  %s17_s10 = int_to_ptr.vmem [resolvable:$true] %s16_s10  ;;  %s27_s12 = int_to_ptr.vmem [resolvable:$true] %s26_s12 }
   0x4   :  { %s103_s13 = scalar_lea.vmem %s17_s10, 128  ;;  %p108_p1 = scmp.lt.s32.totalorder %s17_s10, %s17_s10 }
   0x5   :  { %p104_p0 = scmp.ne.s32.totalorder %s17_s10, %s103_s13  ;;  %p109_p2 = scmp.lt.s32.totalorder %s103_s13, %s103_s13 }
   0x7   :  { %p110_p3 = por %p109_p2, %p108_p1 }
   0x9   :  { %p111_p4 = pnand %p110_p3, %p104_p0 }
   0xb   :  { %114 = shalt.err (!%p111_p4)
}
   0xc   :  { %19 = dma.hbm_to_vmem [thread:$0]  %s188_s0, 128, %s17_s10, [#allocation3]  }
   0xd   :  { %s123_s16 = scalar_lea.vmem %s27_s12, 128  ;;  %p128_p6 = scmp.lt.s32.totalorder %s27_s12, %s27_s12 }
   0xe   :  { %p124_p5 = scmp.ne.s32.totalorder %s27_s12, %s123_s16  ;;  %p129_p7 = scmp.lt.s32.totalorder %s123_s16, %s123_s16 }
  0x10   :  { %p130_p8 = por %p129_p7, %p128_p6 }
  0x12   :  { %p131_p9 = pnand %p130_p8, %p124_p5 }
  0x14   :  { %134 = shalt.err (!%p131_p9)
}
  0x15   :  { %29 = dma.hbm_to_vmem [thread:$0]  %s189_s1, 128, %s27_s12, [#allocation6]  }
  0x16   :  { %155 = dma.done.wait [#allocation3], 128  }
  0x17   :  { %156 = vsyncadd [#allocation3], 4294967168 }
  0x18   :  { %157 = dma.done.wait [#allocation6], 128  }
  0x19   :  { %158 = vsyncadd [#allocation6], 4294967168  ;;  %v36_v0 = vld [vmem:[#allocation2] sm:$0xff]  ;;  %v37_v6 = vld [vmem:[#allocation5] sm:$0xff]  ;;  %v57_v7 = vlaneseq  ;;  %s163_s0 = smov [#allocation7]  }
  0x1a   :  { %v41_v1 = vand.u32 2147483647, %v36_v0  ;;  %v86_v8 = vtrunc.f32 %v37_v6  ;;  %v40_v19 = vmax.f32 %v36_v0, 0.0  ;;  %s76_s1 = sshll.u32 %s163_s0, 4  ;;  %s77_s1 = int_to_ptr.vmem [resolvable:$true] %s76_s1 }
  0x1b   :  { %v58_v10 = vshrl.u32 %v57_v7, 7  ;;  %v60_v14 = vand.u32 127, %v57_v7  ;;  %s135_s19 = scalar_lea.vmem %s77_s1, 128  ;;  %p140_p11 = scmp.lt.s32.totalorder %s77_s1, %s77_s1 }
  0x1c   :  { %v42_v2 = vsub.f32 0.0, %v41_v1  ;;  %v87_v11 = vcvt.f32.s32 %v86_v8  ;;  %p136_p10 = scmp.ne.s32.totalorder %s77_s1, %s135_s19  ;;  %p141_p12 = scmp.lt.s32.totalorder %s135_s19, %s135_s19 }
  0x1d   :  { %v64_v15 = vmul.u32 128, %v58_v10 }
  0x1e   :  { %v43_v3 = vmul.f32 1.442695, %v42_v2  ;;  %v39_v16 = vcvt.s32.f32 %v87_v11  ;;  %p142_p13 = por %p141_p12, %p140_p11 }
  0x1f   :  { %v65_v21 = vadd.s32 %v64_v15, %v60_v14 }
  0x20   :  { %91 = vpow2.f32 %v43_v3  ;;  %v55_v22 = vmul.f32 %v39_v16, %v36_v0  ;;  %p143_p0 = pnand %p142_p13, %p136_p10 }
  0x21   :  { %vm66_vm1 = vcmp.lt.s32.totalorder %v65_v21, 256 }
  0x2d   :  { %v92_v4 = vpop.eup %91 }
  0x2e   :  { %v45_v5 = vadd.f32 1.0, %v92_v4  ;;  %v48_v9 = vmul.f32 -0.5, %v92_v4  ;;  %v51_v13 = vand.u32 2147483647, %v92_v4 }
  0x30   :  { %93 = vlog2.f32 %v45_v5  ;;  %v49_v12 = vadd.f32 1.0, %v48_v9  ;;  %vm52_vm0 = vcmp.lt.f32.partialorder %v51_v13, 0.0004427343 }
  0x32   :  { %v50_v17 = vmul.f32 %v92_v4, %v49_v12 }
  0x3d   :  { %v94_v18 = vpop.eup %93 }
  0x3e   :  { %v47_v20 = vmul.f32 0.6931472, %v94_v18 }
  0x40   :  { %v53_v23 = vsel %vm52_vm0, %v50_v17, %v47_v20 }
  0x41   :  { %v54_v24 = vadd.f32 %v53_v23, %v40_v19 }
  0x43   :  { %v56_v25 = vsub.f32 %v55_v22, %v54_v24 }
  0x45   :  { %v67_v26 = vsel %vm66_vm1, %v56_v25, 0.0 }
  0x46   :  { %69 = vst [vmem:[#allocation7] sm:$0xff] %v67_v26 }
  0x47   :  { %146 = shalt.err (!%p143_p0)
}
  0x48   :  { %79 = dma.vmem_to_hbm [thread:$0]  %s77_s1, 128, %s190_s2, [#allocation4]  }
  0x49   :  { %159 = dma.done.wait [#allocation4], 128  }
  0x4a   :  { %160 = vsyncadd [#allocation4], 4294967168 }
  0x4b   :  { %83 = vsyncpa [#allocation3], 1 }
  0x4c   :  { %84 = vsyncpa [#allocation6], 1 }
  0x4d   :  { %85 = vsyncpa [#allocation4], 1 }

</bundles_post_ra>
